<compile_context>
chip_gen: v7x
topology: tpu7x:2x2x1
jax: 0.10.0
libtpu: 0.0.40
codegen_flags: <defaults>
</compile_context>

<pallas_src>
import jax
import jax.numpy as jnp
from jax.experimental import pallas as pl
from jax.experimental.pallas import tpu as pltpu

EPS = 1e-5  # nn.BatchNorm1d default eps


def _conv_im2col(x, w_ref):
    """Conv1d(k=3, p=1, no bias) for one batch as a single MXU matmul.

    x:     (Cin, L) activation tile (f32 in VMEM)
    w_ref: (Cout, 3*Cin) im2col-reshaped weight, tap-major [k=0 | k=1 | k=2]
    returns (Cout, L) f32
    """
    c_in, length = x.shape

    # Shifted taps built in-kernel (padding=1 -> zero at the edges).  No padded
    # copy of the input ever exists in HBM.
    zero_col = jnp.zeros((c_in, 1), dtype=x.dtype)
    x_m1 = jnp.concatenate([zero_col, x[:, : length - 1]], axis=1)  # x[l-1]
    x_p1 = jnp.concatenate([x[:, 1:], zero_col], axis=1)            # x[l+1]

    # im2col activation slab: contraction axis ordered [k=0 | k=1 | k=2] blocks
    # of Cin each, matching the (Cout, 3*Cin) weight layout.
    act = jnp.concatenate([x_m1, x, x_p1], axis=0)                  # (3*Cin, L)

    # Single MXU matmul, f32 accumulation (operands may be bf16 on v6e/v7x).
    return jnp.dot(
        w_ref[...],
        act.astype(w_ref.dtype),
        preferred_element_type=jnp.float32,
    )                                                               # (Cout, L)


def conv_stats_kernel(x_ref, w_ref, stats_ref):
    """Pass 1: per-batch conv + fused per-channel partial sum / sum-of-squares.

    x_ref:     (1, Cin, L)   one batch of the input
    w_ref:     (Cout, 3*Cin) im2col conv weight
    stats_ref: (1, Cout, 2)  partial [:, :, 0] = sum, [:, :, 1] = sum of squares
                             for this batch (combined across N in the wrapper)
    """
    conv = _conv_im2col(x_ref[0], w_ref)                            # (Cout, L)
    s = jnp.sum(conv, axis=1, keepdims=True)                        # (Cout, 1)
    s2 = jnp.sum(conv * conv, axis=1, keepdims=True)                # (Cout, 1)
    stats_ref[0] = jnp.concatenate([s, s2], axis=1)                 # (Cout, 2)


def bn_relu_kernel(x_ref, w_ref, ss_ref, o_ref):
    """Pass 2: recompute conv, apply folded BN (scale/shift) + ReLU.

    x_ref:  (1, Cin, L)
    w_ref:  (Cout, 3*Cin)
    ss_ref: (Cout, 2) packed [scale, shift]  (BN already folded in the wrapper)
    o_ref:  (1, Cout, L)
    """
    conv = _conv_im2col(x_ref[0], w_ref)                            # (Cout, L)
    scale = ss_ref[:, 0:1]                                          # (Cout, 1)
    shift = ss_ref[:, 1:2]                                          # (Cout, 1)
    y = conv * scale + shift                 # one mul + one add per element (VPU)
    o_ref[0] = jnp.maximum(y, 0.0).astype(o_ref.dtype)


def batchnorm_w_fusion(x, w, gamma, beta, *, matmul_dtype=jnp.float32):
    """x: (N, C, L) f32; w: (C, C, 3) f32 (Conv1d weight); gamma/beta: (C,) f32."""
    N, C, L = x.shape
    assert w.shape == (C, C, 3)

    # im2col weight: (Cout, Cin, 3) -> (Cout, 3, Cin) -> (Cout, 3*Cin), tap-major
    # so it matches the [x(l-1); x(l); x(l+1)] stacking of the activation slab.
    w2 = jnp.transpose(w, (0, 2, 1)).reshape(C, 3 * C).astype(matmul_dtype)
    x = x.astype(jnp.float32)

    # ---- Pass 1: conv + per-batch partial BN statistics (fully parallel grid).
    partial = pl.pallas_call(
        conv_stats_kernel,
        grid=(N,),
        in_specs=[
            pl.BlockSpec((1, C, L), lambda n: (n, 0, 0)),
            pl.BlockSpec((C, 3 * C), lambda n: (0, 0)),
        ],
        out_specs=pl.BlockSpec((1, C, 2), lambda n: (n, 0, 0)),
        out_shape=jax.ShapeDtypeStruct((N, C, 2), jnp.float32),
        compiler_params=pltpu.CompilerParams(
            dimension_semantics=("parallel",),
        ),
    )(x, w2)

    # ---- Tiny wrapper-side combine + BN fold (C elements; negligible).
    stats = jnp.sum(partial, axis=0)                       # (C, 2) global sum/sumsq
    inv_count = 1.0 / float(N * L)
    mean = stats[:, 0] * inv_count                         # (C,)
    var = stats[:, 1] * inv_count - mean * mean            # biased variance (BN norm)
    scale = gamma.astype(jnp.float32) * jax.lax.rsqrt(var + EPS)
    shift = beta.astype(jnp.float32) - mean * scale
    ss = jnp.stack([scale, shift], axis=1)                 # (C, 2) packed constants

    # ---- Pass 2: recompute conv, folded BN + ReLU (fully parallel grid).
    out = pl.pallas_call(
        bn_relu_kernel,
        grid=(N,),
        in_specs=[
            pl.BlockSpec((1, C, L), lambda n: (n, 0, 0)),
            pl.BlockSpec((C, 3 * C), lambda n: (0, 0)),
            pl.BlockSpec((C, 2), lambda n: (0, 0)),
        ],
        out_specs=pl.BlockSpec((1, C, L), lambda n: (n, 0, 0)),
        out_shape=jax.ShapeDtypeStruct((N, C, L), jnp.float32),
        compiler_params=pltpu.CompilerParams(
            dimension_semantics=("parallel",),
        ),
    )(x, w2, ss)
    return out


def _reference(x, w, gamma, beta):
    # Pure-JAX reference: Conv1d(k=3, p=1, no bias) -> train-mode BN -> ReLU.
    xp = jnp.pad(x, ((0, 0), (0, 0), (1, 1)))
    L = x.shape[2]
    conv = sum(
        jnp.einsum("oi,nil->nol", w[:, :, k], xp[:, :, k:k + L]) for k in range(3)
    )
    mean = jnp.mean(conv, axis=(0, 2), keepdims=True)
    var = jnp.mean((conv - mean) ** 2, axis=(0, 2), keepdims=True)
    y = (conv - mean) / jnp.sqrt(var + EPS) * gamma[None, :, None] + beta[None, :, None]
    return jnp.maximum(y, 0.0)


if __name__ == "__main__":
    # Small shapes consistent with Conv1d/BatchNorm1d: (batch, filters, length)
    N, C, L = 2, 4, 16
    key = jax.random.PRNGKey(0)
    kx, kw, kg, kb = jax.random.split(key, 4)

    x = jax.random.normal(kx, (N, C, L), dtype=jnp.float32)
    w = jax.random.normal(kw, (C, C, 3), dtype=jnp.float32) * 0.1
    # Non-trivial affine params to exercise the folded scale/shift path.
    gamma = 1.0 + 0.1 * jax.random.normal(kg, (C,), dtype=jnp.float32)
    beta = 0.1 * jax.random.normal(kb, (C,), dtype=jnp.float32)

    out = batchnorm_w_fusion(x, w, gamma, beta)
    out = jax.block_until_ready(out)

    ref = _reference(x, w, gamma, beta)
    assert out.shape == (N, C, L)
    assert jnp.allclose(out, ref, atol=1e-4, rtol=1e-4), "mismatch vs reference"

    print("KERNEL_OK")
</pallas_src>

<mosaic_0001>
module attributes {stable_mosaic.version = 11 : i64} {
  func.func @conv_stats_kernel(%arg0: i32, %arg1: memref<1x4x16xf32, #tpu.memory_space<vmem>>, %arg2: memref<4x12xf32, #tpu.memory_space<vmem>>, %arg3: memref<1x4x2xf32, #tpu.memory_space<vmem>>) attributes {dimension_semantics = [#tpu.dimension_semantics<parallel>], iteration_bounds = array<i64: 2>, scalar_prefetch = 0 : i64, scratch_operands = 0 : i64, tpu.core_type = #tpu.core_type<tc>, window_params = [{transform_indices = @transform_0, window_bounds = array<i64: 1, 4, 16>}, {pipeline_mode = #tpu.pipeline_mode<synchronous>, transform_indices = @transform_1, window_bounds = array<i64: 4, 12>}, {transform_indices = @transform_2, window_bounds = array<i64: 1, 4, 2>}]} {
    %c0 = arith.constant 0 : index
    %c0_0 = arith.constant 0 : index
    %c0_1 = arith.constant 0 : index
    %0 = vector.load %arg1[%c0, %c0_0, %c0_1] : memref<1x4x16xf32, #tpu.memory_space<vmem>>, vector<1x4x16xf32>
    %1 = vector.shape_cast %0 : vector<1x4x16xf32> to vector<4x16xf32>
    %cst = arith.constant 0.000000e+00 : f32
    %2 = vector.broadcast %cst : f32 to vector<4x1xf32>
    %3 = vector.extract_strided_slice %1 {offsets = [0, 0], sizes = [4, 15], strides = [1, 1]} : vector<4x16xf32> to vector<4x15xf32>
    %4 = tpu.concatenate %2, %3 in 1 : vector<4x1xf32>, vector<4x15xf32> -> vector<4x16xf32>
    %5 = vector.extract_strided_slice %1 {offsets = [0, 1], sizes = [4, 15], strides = [1, 1]} : vector<4x16xf32> to vector<4x15xf32>
    %6 = tpu.concatenate %5, %2 in 1 : vector<4x15xf32>, vector<4x1xf32> -> vector<4x16xf32>
    %7 = tpu.concatenate %4, %1, %6 in 0 : vector<4x16xf32>, vector<4x16xf32>, vector<4x16xf32> -> vector<12x16xf32>
    %c0_2 = arith.constant 0 : index
    %c0_3 = arith.constant 0 : index
    %8 = vector.load %arg2[%c0_2, %c0_3] : memref<4x12xf32, #tpu.memory_space<vmem>>, vector<4x12xf32>
    %cst_4 = arith.constant dense<0.000000e+00> : vector<4x16xf32>
    %9 = tpu.matmul %8, %7, %cst_4 {dimension_numbers = #tpu.dot_dimension_numbers<[1], [0], [0], [1], [0, 0, 1, 1], [], []>} : vector<4x12xf32>, vector<12x16xf32>, vector<4x16xf32> -> vector<4x16xf32>
    %cst_5 = arith.constant dense<0.000000e+00> : vector<4xf32>
    %10 = vector.multi_reduction <add>, %9, %cst_5 [1] : vector<4x16xf32> to vector<4xf32>
    %11 = vector.shape_cast %10 : vector<4xf32> to vector<4x1xf32>
    %12 = arith.mulf %9, %9 : vector<4x16xf32>
    %cst_6 = arith.constant dense<0.000000e+00> : vector<4xf32>
    %13 = vector.multi_reduction <add>, %12, %cst_6 [1] : vector<4x16xf32> to vector<4xf32>
    %14 = vector.shape_cast %13 : vector<4xf32> to vector<4x1xf32>
    %15 = tpu.concatenate %11, %14 in 1 : vector<4x1xf32>, vector<4x1xf32> -> vector<4x2xf32>
    %c0_7 = arith.constant 0 : index
    %c0_8 = arith.constant 0 : index
    %c0_9 = arith.constant 0 : index
    %16 = vector.load %arg3[%c0_7, %c0_8, %c0_9] : memref<1x4x2xf32, #tpu.memory_space<vmem>>, vector<1x4x2xf32>
    %17 = vector.shape_cast %16 : vector<1x4x2xf32> to vector<4x2xf32>
    %18 = vector.shape_cast %15 : vector<4x2xf32> to vector<1x4x2xf32>
    tpu.vector_store %arg3[%c0_7, %c0_8, %c0_9], %18 {strides = array<i32>} : memref<1x4x2xf32, #tpu.memory_space<vmem>>, vector<1x4x2xf32>,
    return
  }
  func.func @transform_0(%arg0: i32) -> (i32, i32, i32) {
    %c0_i32 = arith.constant 0 : i32
    %c0_i32_0 = arith.constant 0 : i32
    %c0_i32_1 = arith.constant 0 : i32
    return %arg0, %c0_i32, %c0_i32_0 : i32, i32, i32
  }
  func.func @transform_1(%arg0: i32) -> (i32, i32) {
    %c0_i32 = arith.constant 0 : i32
    %c0_i32_0 = arith.constant 0 : i32
    %c0_i32_1 = arith.constant 0 : i32
    return %c0_i32, %c0_i32_0 : i32, i32
  }
  func.func @transform_2(%arg0: i32) -> (i32, i32, i32) {
    %c0_i32 = arith.constant 0 : i32
    %c0_i32_0 = arith.constant 0 : i32
    %c0_i32_1 = arith.constant 0 : i32
    return %arg0, %c0_i32, %c0_i32_0 : i32, i32, i32
  }
}

</mosaic_0001>

<bundles_post_ra>
// kernel: tpu_custom_call.1
= control target key start
LH: loop header
LB: loop body
LE: loop exit
PB: predicated region body
PF: predicated region fallthrough
CT: control target
= control target key end

     0   :  { %7 = vsyncpa [#allocation3], 0  ;;  %s707_s0 = inlined_call_operand.hbm [shape: f32[2,4,16], index: 0, kind: input, shape index: {}]   ;;  %s708_s1 = inlined_call_operand.hbm [shape: f32[4,12], index: 1, kind: input, shape index: {}]   ;;  %s709_s2 = inlined_call_operand.vmem [shape: f32[2,4,2], index: 2, kind: output, shape index: {}]  }
   0x1   :  { %9 = vsyncpa [#allocation3 + $0x1], 0 }
   0x2   :  { %10 = vsyncpa [#allocation5], 0  ;;  %s557_s9 = smov 0   ;;  %s559_s10 = smov 0  }
   0x3   :  { %s561_s11 = smov 0   ;;  %s563_s12 = smov 0  }
   0x4 LB: > { %s576_s13 = sadd.s32 4294967295, %s532_s12   ;;  %p36_p0 = scmp.ne.s32.totalorder %s524_s10, %s520_s9  ;;  %s532_s12 = sphi %s563_s12, %s727_s12   ;;  %s528_s11 = sphi %s561_s11, %s726_s11   ;;  %s524_s10 = sphi %s559_s10, %s725_s10   ;;  %s520_s9 = sphi %s557_s9, %s724_s9  }
   0x5   : > { %p710_p1 = scmp.eq.s32.totalorder %s576_s13, 0  ;;  %p353_p2 = scmp.ge.s32.totalorder %s532_s12, 1 }
   0x6   : > { %p94_p3 = scmp.lt.s32.totalorder %s532_s12, 3  ;;  %s534_s16 = smov [#allocation4]  }
   0x7   : > { %p584_p4 = por %p710_p1, %p36_p0  ;;  %s107_s17 = sshll.u32 %s534_s16, 4  ;;  %s108_s17 = int_to_ptr.vmem [resolvable:$true] %s107_s17 }
   0x8   : > { %p588_p5 = pnand %p353_p2, %p94_p3  ;;  %s595_s18 = sadd.s32 1, %s532_s12  }
   0x9   : > { %s713_s14 = scalar_select %p584_p4, 1, 0 }
   0xa   : > { %s714_s15 = scalar_select %p588_p5, 1, 0 }
   0xb   : > { %p386_p6 = pneg %p588_p5  ;;  %s20_s20 = ssub.s32 %s532_s12, %s595_s18 }
   0xc   : > { %p605_p8 = scmp.eq.s32.totalorder %s20_s20, 0  ;;  %s23_s22 = sadd.s32 1, %s528_s11 }
   0xd   : > { %p599_p7 = pnand %p386_p6, %p710_p1  ;;  %s436_s25 = scalar_lea.hbm %s708_s1, 64 }
   0xe   : > { %s716_s21 = scalar_select %p605_p8, 1, 0 }
   0xf   : > { %p437_p10 = scmp.ne.s32.totalorder %s708_s1, %s436_s25  ;;  %p438_p11 = pneg %p599_p7 }
  0x10   : > { %p443_p0 = scmp.lt.u32.totalorder %s436_s25, %s708_s1 }
  0x11   : > { %p439_p12 = pnand %p438_p11, %p437_p10 }
  0x13   : > { %p440_p13 = pneg %p439_p12 }
  0x15   : > { %p445_p2 = pnand %p443_p0, %p440_p13 }
  0x17   : > { %448 = shalt.err (!%p445_p2)
}
  0x18   : > { %s449_s30 = scalar_lea.vmem %s108_s17, 64  ;;  %p457_p9 = scmp.lt.s32.totalorder %s108_s17, %s108_s17 }
  0x19   : > { %p450_p3 = scmp.ne.s32.totalorder %s108_s17, %s449_s30  ;;  %p458_p4 = scmp.lt.s32.totalorder %s449_s30, %s449_s30 }
  0x1b   : > { %p452_p6 = pnand %p450_p3, %p438_p11  ;;  %p459_p5 = por %p458_p4, %p457_p9 }
  0x1d   : > { %p453_p1 = pneg %p452_p6 }
  0x1f   : > { %p460_p8 = pnand %p459_p5, %p453_p1 }
  0x21   : > { %463 = shalt.err (!%p460_p8)
}
  0x22   : > { %389 = dma.hbm_to_vmem [thread:$0]  (!%p599_p7), %s708_s1, 64, %s108_s17, [#allocation5]  }
  0x23   : > { %p717_p10 = scmp.ne.s32.totalorder %s716_s21, 0  ;;  %p31_p4 = scmp.eq.s32.totalorder %s532_s12, 0 }
  0x24   : > { %p395_p1 = scmp.lt.s32.totalorder %s532_s12, 2  ;;  %s118_s6 = sand.u32 1, %s528_s11  }
  0x25   : > { %s631_s5 = scalar_select %p717_p10, %s528_s11, %s23_s22  }
  0x26   : > { %s357_s7 = sshll.u32 %s532_s12, 6  ;;  %p718_p5 = scmp.ne.s32.totalorder %s528_s11, %s524_s10 }
  0x27   : > { %s356_s8 = sshll.u32 %s118_s6, 2  ;;  %s643_s19 = scalar_lea.hbm %s707_s0, %s357_s7 }
  0x28   : > { %p32_p8 = por %p31_p4, %p718_p5  ;;  %s122_s20 = scalar_lea.vmem [#allocation2], %s356_s8 }
  0x29   : > { %s129_s12 = sshll.u32 %s122_s20, 4  ;;  %s119_s21 = scalar_lea.sflag [#allocation3], %s118_s6  ;;  %s649_s12 = int_to_ptr.vmem [resolvable:$true] %s129_s12 }
  0x2a   : > { %p645_p7 = pnand %p395_p1, %p32_p8  ;;  %s464_s22 = scalar_lea.hbm %s643_s19, 64 }
  0x2b   : > { %p465_p9 = scmp.ne.s32.totalorder %s643_s19, %s464_s22  ;;  %s469_s25 = scalar_lea.hbm %s707_s0, 128 }
  0x2c   : > { %p466_p11 = pneg %p645_p7  ;;  %p470_p0 = scmp.lt.u32.totalorder %s643_s19, %s707_s0 }
  0x2d   : > { %p471_p2 = scmp.lt.u32.totalorder %s469_s25, %s464_s22  ;;  %p473_p6 = scmp.lt.u32.totalorder %s464_s22, %s643_s19 }
  0x2e   : > { %p467_p12 = pnand %p466_p11, %p465_p9 }
  0x2f   : > { %p472_p3 = por %p471_p2, %p470_p0 }
  0x30   : > { %p468_p13 = pneg %p467_p12 }
  0x31   : > { %p474_p10 = por %p473_p6, %p472_p3 }
  0x33   : > { %p475_p4 = pnand %p474_p10, %p468_p13 }
  0x35   : > { %478 = shalt.err (!%p475_p4)
}
  0x36   : > { %s479_s28 = scalar_lea.vmem %s649_s12, 64  ;;  %s535_s29 = smov [#allocation2]  }
  0x37   : > { %p480_p1 = scmp.ne.s32.totalorder %s649_s12, %s479_s28  ;;  %s484_s30 = sshll.u32 %s535_s29, 4  ;;  %s485_s30 = int_to_ptr.vmem [resolvable:$false] %s484_s30 }
  0x38   : > { %s486_s3 = scalar_lea.vmem %s485_s30, 128  ;;  %p487_p9 = scmp.lt.s32.totalorder %s649_s12, %s485_s30 }
  0x39   : > { %p482_p5 = pnand %p480_p1, %p466_p11  ;;  %p488_p12 = scmp.lt.s32.totalorder %s486_s3, %s479_s28 }
  0x3b   : > { %p483_p8 = pneg %p482_p5  ;;  %p489_p0 = por %p488_p12, %p487_p9 }
  0x3d   : > { %p490_p2 = pnand %p489_p0, %p483_p8 }
  0x3f   : > { %493 = shalt.err (!%p490_p2)
}
  0x40   : > { %393 = dma.hbm_to_vmem [thread:$0]  (!%p645_p7), %s643_s19, 64, %s649_s12, %s119_s21  }
  0x41   : > { %p720_p13 = scmp.ne.s32.totalorder %s714_s15, 0 }
  0x42   : > { %s140_s4 = sand.u32 (!%p720_p13), 1, %s524_s10   ;;  %p721_p11 = scmp.ne.s32.totalorder (!%p720_p13), %s713_s14, 0 }
  0x43   : > { %138 = sbr.rel (%p720_p13) target bundleno = 566 (0x236), region = 28  ;;  %s359_s6 = sshll.u32 (!%p720_p13), %s140_s4, 2 }
  0x44   : > { %s141_s7 = scalar_lea.sflag (!%p720_p13), [#allocation3], %s140_s4  ;;  %s144_s8 = scalar_lea.vmem (!%p720_p13), [#allocation2], %s359_s6 }
  0x4a   : > { %511 = dma.done.wait (%p721_p11), %s141_s7, 64  }
  0x4b   : > { %513 = vsyncadd (%p721_p11), %s141_s7, 4294967232  ;;  %p722_p3 = scmp.eq.s32.totalorder %s576_s13, 0 }
  0x4d   : > { %515 = dma.done.wait (%p722_p3), [#allocation5], 64   ;;  %p723_p6 = pmov %p722_p3 }
  0x4e   : > { %v536_v0 = vmov 0.0|0.0   ;;  %vm537_vm0 = vmmov 0   ;;  %v538_v1 = vmov 0.0   ;;  %v172_v2 = vld [vmem:[%s144_s8] sm:$0xf]  ;;  %s539_s15 = smov 1  }
  0x4f   : > { %517 = vsyncadd (%p723_p6), [#allocation5], 4294967232  ;;  %376 = vmatprep.subr.bf16.mxu0 %v536_v0  ;;  %373 = vmatprep.mubr.msk.f32.mxu0 %vm537_vm0, %v538_v1  ;;  %s540_s9 = smov 127   ;;  %vm177_vm1 = vcmask 7168   ;;  %v184_v4 = vrot.slane %v172_v2, 4  ;;  %vm182_vm2 = vcmask 121856  }
  0x50   : > { %174 = vrot.lane.b32.xlu0 %v172_v2, %s539_s15  ;;  %vm186_vm3 = vcmask 1043456   ;;  %vm541_vm4 = vmmov 1   ;;  %v188_v10 = vld [vmem:[#allocation4] sm:$0xf]  ;;  %vm189_vm6 = vcmask 97280   ;;  %vm266_vm7 = vcmask 125952  }
  0x51   : > { %vm378_vm5 = vmpackc.low %vm186_vm3, %vm541_vm4  ;;  %p168_p7 = scmp.lt.s32.totalorder %s576_s13, 1  ;;  %vm275_vm8 = vcmask 11264  }
  0x53   : > { %s729_s13 = smov (!%p168_p7, %s576_s13), 1 }
  0x54   : > { %179 = vrot.lane.b32.xlu0 %v172_v2, %s540_s9  ;;  %s361_s14 = sshll.u32 %s729_s13, 2 }
  0x55   : > { %s171_s17 = scalar_lea.vmem %s709_s2, %s361_s14 }
  0xc2   : > { %v175_v3 = vpop.permute.xlu0 %174 }
  0xc3   : > { %v178_v5 = vsel %vm177_vm1, 0.0, %v175_v3 }
  0xc4   : > { %v187_v8 = vsel %vm186_vm3, %v178_v5, %v184_v4 }
  0xc6   : > { %v180_v6 = vpop.permute.xlu0 %179 }
  0xc7   : > { %v183_v7 = vsel %vm182_vm2, %v180_v6, 0.0 }
  0xc8   : > { %v377_v9 = vpack.c.bf16 %v183_v7, %v187_v8 }
  0xca   : > { %379 = vmatpush3.bf16.msk.msra.mxu0 %vm378_vm5, %v377_v9 }
  0xcd   : > { %374 = vmatmul.mubr.msk.f32.vlgmr.msra.gmra.mrb[0].mxu0 %vm189_vm6, %v188_v10 }
 0x1a0   : > { %v262_v11 = vpop.f32.mrb[0].mxu0 }
 0x1a1   : > { %v270_v12 = vmul.f32 %v262_v11, %v262_v11  ;;  %v375_v13 = vpop.f32.mrb[1].mxu0  ;;  %v267_v14 = vsel %vm266_vm7, %v262_v11, 0.0 }
 0x1a2   : > { %268 = vadd.xlane.f32.xlu1 %v267_v14 }
 0x1a3   : > { %v271_v15 = vsel %vm266_vm7, %v270_v12, 0.0 }
 0x1a6   : > { %272 = vadd.xlane.f32.xlu1 %v271_v15 }
 0x22f   : > { %v269_v16 = vpop.xlane.xlu1 %268 }
 0x233   : > { %v273_v17 = vpop.xlane.xlu1 %272 }
 0x234   : > { %v274_v18 = vsel %vm177_vm1, %v269_v16, %v273_v17 }
 0x235   : > { %276 = vst.msk [vmem:[%s171_s17] sm:$0xf] %vm275_vm8, %v274_v18 }
 0x236 PF: > { %p13_p10 = scmp.ge.s32.totalorder %s595_s18, 4   ;;  %s724_s9 = smov %s524_s10 }
 0x237   : > { %s725_s10 = smov %s528_s11  ;;  %s726_s11 = smov %s631_s5 }
 0x238   : > { %s727_s12 = smov %s595_s18  ;;  %15 = sbr.rel (!%p13_p10) target bundleno = 4 (0x4), region = 72 }
 0x23f   :  { %296 = vsyncpa [#allocation3], 1 }
 0x240   :  { %298 = vsyncpa [#allocation3 + $0x1], 1 }
 0x241   :  { %299 = vsyncpa [#allocation5], 1 }

</bundles_post_ra>
